<compile_context>
chip_gen: v5e
topology: v5e:2x2
jax: 0.10.0
libtpu: 0.0.40
codegen_flags: <defaults>
</compile_context>

<pallas_src>
import functools
import math

import jax
import jax.numpy as jnp
from jax import lax
from jax.experimental import pallas as pl
from jax.experimental.pallas import tpu as pltpu


# ------------------------------ phase 1: per-sample CE ------------------------------

def _ce_loss_kernel(x_ref, y_ref, loss_ref, *, batch: int):
    """One (TB, C) logits tile -> (TB, 1) per-sample cross-entropy column."""
    i = pl.program_id(0)

    x = x_ref[...].astype(jnp.float32)            # [TB, C] (per-tile upcast, in VMEM)
    y = y_ref[...]                                # [TB, 1] int32 labels
    tb, c = x.shape

    row_max = jnp.max(x, axis=-1, keepdims=True)                                    # [TB, 1]
    lse = row_max + jnp.log(jnp.sum(jnp.exp(x - row_max), axis=-1, keepdims=True))  # [TB, 1]
    class_iota = lax.broadcasted_iota(jnp.int32, (tb, c), 1)                        # [TB, C]
    # NOTE: labels are assumed in-range (no ignore_index handling).
    picked = jnp.sum(jnp.where(class_iota == y, x, 0.0), axis=-1, keepdims=True)    # [TB, 1]
    # CE >= 0 (lse >= max(x) >= x[label] holds numerically as well); the clamp only
    # guards pathological inputs so the f32 bit pattern stays a monotone int32 key
    # for the bisection in phase 2.
    losses = jnp.maximum(lse - picked, 0.0)                                         # [TB, 1]

    # Rows past the true batch (padding of the last tile) must never enter the top-k:
    # force them to 0.0, which cannot displace any real (>= 0) loss.
    row_iota = lax.broadcasted_iota(jnp.int32, (tb, 1), 0)
    losses = jnp.where(i * tb + row_iota < batch, losses, 0.0)

    loss_ref[...] = losses                        # (TB, 1) column block — no relayout


# ---------------------------- phase 2: top-k mean select ----------------------------

def _topk_mean_kernel(loss_ref, out_ref, *, k: int):
    """loss_ref: (rows, W) f32 slab of per-sample losses (all >= 0) -> mean of top-k."""
    rows, _ = loss_ref.shape
    k_f = jnp.float32(k)

    def _count_ge(cand):
        # count(losses whose int32-key >= cand), streamed one row-slab at a time so the
        # live working set is a few vregs regardless of the batch size.
        def body(r, acc):
            keys = pltpu.bitcast(loss_ref[pl.ds(r, 1), :], jnp.int32)
            return acc + jnp.sum(jnp.where(keys >= cand, 1.0, 0.0))
        return lax.fori_loop(0, rows, body, jnp.float32(0.0))

    # Largest 31-bit integer t with count(keys >= t) >= k  ==  the k-th largest key
    # (exact; f32 bits of non-negative floats are an order-preserving int32 key).
    # NOTE: the f32 element counts are exact only up to 2^24 losses (B < ~16M).
    def bit_body(_, carry):
        t, bit = carry
        cand = t | bit
        t = jnp.where(_count_ge(cand) >= k_f, cand, t)
        return t, jnp.right_shift(bit, 1)

    t, _ = lax.fori_loop(0, 31, bit_body, (jnp.int32(0), jnp.int32(1 << 30)))

    # One more streamed pass: sum/count of strictly-greater losses + the threshold value.
    def tail_body(r, carry):
        cnt_gt, sum_gt, t_val = carry
        vals = loss_ref[pl.ds(r, 1), :]
        keys = pltpu.bitcast(vals, jnp.int32)
        gt = keys > t
        cnt_gt = cnt_gt + jnp.sum(jnp.where(gt, 1.0, 0.0))
        sum_gt = sum_gt + jnp.sum(jnp.where(gt, vals, 0.0))
        t_val = jnp.maximum(t_val, jnp.max(jnp.where(keys <= t, vals, 0.0)))
        return cnt_gt, sum_gt, t_val

    cnt_gt, sum_gt, t_val = lax.fori_loop(
        0, rows, tail_body,
        (jnp.float32(0.0), jnp.float32(0.0), jnp.float32(0.0)))

    # Ties at the threshold contribute (k - cnt_gt) copies of t_val — same mean as
    # torch.topk's arbitrary tie selection.
    out_ref[0, 0] = (sum_gt + (k_f - cnt_gt) * t_val) / k_f


# ------------------------------------ wrapper ----------------------------------------

def _vmem_budgets():
    """(per-x-buffer budget, scoped-VMEM limit), sized per TPU generation."""
    try:
        cap = int(pltpu.get_tpu_info().vmem_capacity_bytes)
    except Exception:                               # unknown part -> v7x-safe defaults
        cap = 64 * 1024 * 1024
    limit = min(96 * 1024 * 1024, (cap * 3) // 4)   # headroom below physical VMEM
    per_buffer = max(4 * 1024 * 1024, limit // 5)   # x is double-buffered (+ y/out/slack)
    return per_buffer, limit


def _choose_batch_tile(B: int, C: int, itemsize: int, per_buffer_budget: int) -> int:
    """Batch-tile rows so the double-buffered (TB, C) logits block fits the budget."""
    tb = per_buffer_budget // (max(itemsize, 1) * C)
    tb = max(8, min(tb, 1024))                      # DMA amortization saturates ~512-1024
    if tb >= 128 and B >= 128:
        tb = (tb // 128) * 128                      # lane-multiple rows
        tb = min(tb, (B // 128) * 128)              # never taller than the array
    else:
        tb = (tb // 8) * 8
        tb = min(tb, -(-B // 8) * 8)
    # TODO(synk): for extremely large C (vocab-scale), tile the class axis with an
    # online logsumexp instead of shrinking TB toward one sublane group.
    return max(tb, 8)


def online_hard_example_mining(x, y, *, batch_size: int, ratio: float = 0.5):
    """x: [B, C] float logits, y: [B] int labels -> scalar f32 mean of the k hardest CE losses."""
    B, C = x.shape
    k = min(int(batch_size * ratio), B)
    k = max(k, 1)                                   # guard k == 0 (empty top-k / div-by-zero)

    per_buffer_budget, vmem_limit = _vmem_budgets()
    tb = _choose_batch_tile(B, C, x.dtype.itemsize, per_buffer_budget)

    x_in = x                                        # native dtype; upcast per tile in-kernel
    y_in = y.astype(jnp.int32).reshape(B, 1)
    if tb > B:
        # Block taller than the whole array (tiny B only): pad the few missing rows.
        # TODO(synk): drop once Pallas block-larger-than-array padding is verified;
        # for B >= tb the grid's partial last block is already handled by the mask.
        x_in = jnp.pad(x_in, ((0, tb - B), (0, 0)))
        y_in = jnp.pad(y_in, ((0, tb - B), (0, 0)))

    g = -(-x_in.shape[0] // tb)                     # grid steps over the batch
    b_pad = g * tb                                  # rows of the per-sample loss vector

    losses = pl.pallas_call(
        functools.partial(_ce_loss_kernel, batch=B),
        out_shape=jax.ShapeDtypeStruct((b_pad, 1), jnp.float32),
        grid_spec=pltpu.PrefetchScalarGridSpec(
            num_scalar_prefetch=0,
            grid=(g,),
            in_specs=[
                pl.BlockSpec((tb, C), lambda i: (i, 0)),    # logits tile (double-buffered)
                pl.BlockSpec((tb, 1), lambda i: (i, 0)),    # label column
            ],
            out_specs=pl.BlockSpec((tb, 1), lambda i: (i, 0)),
        ),
        compiler_params=pltpu.CompilerParams(
            # Independent batch tiles: "parallel" lets the grid shard across both
            # TensorCores on v7x; single-TC parts are unaffected.
            dimension_semantics=("parallel",),
            vmem_limit_bytes=vmem_limit,
        ),
        cost_estimate=pl.CostEstimate(
            flops=6 * B * C,
            transcendentals=B * C,
            bytes_accessed=B * C * x.dtype.itemsize + B * 4 + b_pad * 4,
        ),
    )(x_in, y_in)

    # Free relayout (identical row-major order): (b_pad, 1) -> lane-dense (rows, W).
    w = math.gcd(b_pad, 1024)
    loss_slab = losses.reshape(b_pad // w, w)

    out = pl.pallas_call(
        functools.partial(_topk_mean_kernel, k=k),
        out_shape=jax.ShapeDtypeStruct((1, 1), jnp.float32),
        in_specs=[pl.BlockSpec(memory_space=pltpu.MemorySpace.VMEM)],
        out_specs=pl.BlockSpec(memory_space=pltpu.MemorySpace.SMEM),
        compiler_params=pltpu.CompilerParams(vmem_limit_bytes=vmem_limit),
        cost_estimate=pl.CostEstimate(
            flops=35 * b_pad, transcendentals=0, bytes_accessed=4 * b_pad + 4),
    )(loss_slab)
    return out[0, 0]


# ------------------------------------ self-test --------------------------------------

def _reference(x, y, *, batch_size: int, ratio: float = 0.5):
    B = x.shape[0]
    k = max(min(int(batch_size * ratio), B), 1)
    lse = jax.nn.logsumexp(x.astype(jnp.float32), axis=-1)
    picked = jnp.take_along_axis(x.astype(jnp.float32), y[:, None], axis=-1)[:, 0]
    losses = lse - picked
    return jnp.mean(lax.top_k(losses, k)[0])


if __name__ == "__main__":
    B, C = 8, 32                      # conf.batch_size = 8, ratio = 0.5 -> k = 4
    key = jax.random.PRNGKey(0)
    kx, ky = jax.random.split(key)
    x = jax.random.normal(kx, (B, C), dtype=jnp.float32)
    y = jax.random.randint(ky, (B,), 0, C, dtype=jnp.int32)

    out = online_hard_example_mining(x, y, batch_size=B, ratio=0.5)
    out = jax.block_until_ready(out)

    ref = _reference(x, y, batch_size=B, ratio=0.5)
    assert jnp.allclose(out, ref, atol=1e-5, rtol=1e-5), (out, ref)

    print("KERNEL_OK")
</pallas_src>

<mosaic_0001>
module attributes {stable_mosaic.version = 11 : i64} {
  func.func @_ce_loss_kernel(%arg0: i32, %arg1: memref<8x32xf32, #tpu.memory_space<vmem>>, %arg2: memref<8x1xi32, #tpu.memory_space<vmem>>, %arg3: memref<8x1xf32, #tpu.memory_space<vmem>>) attributes {dimension_semantics = [#tpu.dimension_semantics<parallel>], iteration_bounds = array<i64: 1>, scalar_prefetch = 0 : i64, scratch_operands = 0 : i64, tpu.core_type = #tpu.core_type<tc>, window_params = [{transform_indices = @transform_0, window_bounds = array<i64: 8, 32>}, {transform_indices = @transform_1, window_bounds = array<i64: 8, 1>}, {transform_indices = @transform_2, window_bounds = array<i64: 8, 1>}]} {
    %c0 = arith.constant 0 : index
    %c0_0 = arith.constant 0 : index
    %0 = vector.load %arg1[%c0, %c0_0] : memref<8x32xf32, #tpu.memory_space<vmem>>, vector<8x32xf32>
    %c0_1 = arith.constant 0 : index
    %c0_2 = arith.constant 0 : index
    %1 = vector.load %arg2[%c0_1, %c0_2] : memref<8x1xi32, #tpu.memory_space<vmem>>, vector<8x1xi32>
    %cst = arith.constant dense<0xFF800000> : vector<8xf32>
    %2 = vector.multi_reduction <maximumf>, %0, %cst [1] : vector<8x32xf32> to vector<8xf32>
    %3 = vector.shape_cast %2 : vector<8xf32> to vector<8x1xf32>
    %4 = vector.broadcast %3 : vector<8x1xf32> to vector<8x32xf32>
    %5 = arith.subf %0, %4 : vector<8x32xf32>
    %6 = math.exp %5 : vector<8x32xf32>
    %cst_3 = arith.constant dense<0.000000e+00> : vector<8xf32>
    %7 = vector.multi_reduction <add>, %6, %cst_3 [1] : vector<8x32xf32> to vector<8xf32>
    %8 = vector.shape_cast %7 : vector<8xf32> to vector<8x1xf32>
    %9 = math.log %8 : vector<8x1xf32>
    %10 = arith.addf %3, %9 : vector<8x1xf32>
    %11 = tpu.iota {dimensions = array<i32: 1>} : vector<8x32xi32>
    %12 = vector.broadcast %1 : vector<8x1xi32> to vector<8x32xi32>
    %13 = arith.cmpi eq, %11, %12 : vector<8x32xi32>
    %cst_4 = arith.constant 0.000000e+00 : f32
    %14 = vector.broadcast %cst_4 : f32 to vector<8x32xf32>
    %15 = arith.select %13, %0, %14 : vector<8x32xi1>, vector<8x32xf32>
    %cst_5 = arith.constant dense<0.000000e+00> : vector<8xf32>
    %16 = vector.multi_reduction <add>, %15, %cst_5 [1] : vector<8x32xf32> to vector<8xf32>
    %17 = vector.shape_cast %16 : vector<8xf32> to vector<8x1xf32>
    %18 = arith.subf %10, %17 : vector<8x1xf32>
    %cst_6 = arith.constant 0.000000e+00 : f32
    %19 = vector.broadcast %cst_6 : f32 to vector<8x1xf32>
    %20 = arith.maximumf %18, %19 : vector<8x1xf32>
    %21 = tpu.iota {dimensions = array<i32: 0>} : vector<8x1xi32>
    %c8_i32 = arith.constant 8 : i32
    %22 = arith.muli %arg0, %c8_i32 : i32
    %23 = vector.broadcast %22 : i32 to vector<8x1xi32>
    %24 = arith.addi %23, %21 : vector<8x1xi32>
    %c8_i32_7 = arith.constant 8 : i32
    %25 = vector.broadcast %c8_i32_7 : i32 to vector<8x1xi32>
    %26 = arith.cmpi slt, %24, %25 : vector<8x1xi32>
    %cst_8 = arith.constant 0.000000e+00 : f32
    %27 = vector.broadcast %cst_8 : f32 to vector<8x1xf32>
    %28 = arith.select %26, %20, %27 : vector<8x1xi1>, vector<8x1xf32>
    %c0_9 = arith.constant 0 : index
    %c0_10 = arith.constant 0 : index
    %29 = vector.load %arg3[%c0_9, %c0_10] : memref<8x1xf32, #tpu.memory_space<vmem>>, vector<8x1xf32>
    tpu.vector_store %arg3[%c0_9, %c0_10], %28 {strides = array<i32>} : memref<8x1xf32, #tpu.memory_space<vmem>>, vector<8x1xf32>,
    return
  }
  func.func @transform_0(%arg0: i32) -> (i32, i32) {
    %c0_i32 = arith.constant 0 : i32
    %c0_i32_0 = arith.constant 0 : i32
    return %arg0, %c0_i32 : i32, i32
  }
  func.func @transform_1(%arg0: i32) -> (i32, i32) {
    %c0_i32 = arith.constant 0 : i32
    %c0_i32_0 = arith.constant 0 : i32
    return %arg0, %c0_i32 : i32, i32
  }
  func.func @transform_2(%arg0: i32) -> (i32, i32) {
    %c0_i32 = arith.constant 0 : i32
    %c0_i32_0 = arith.constant 0 : i32
    return %arg0, %c0_i32 : i32, i32
  }
}

</mosaic_0001>

<bundles_post_ra>
// kernel: tpu_custom_call.1
= control target key start
LH: loop header
LB: loop body
LE: loop exit
PB: predicated region body
PF: predicated region fallthrough
CT: control target
= control target key end

     0   :  { %vm13_vm0 = vcmask 261120   ;;  %v57_v1 = vmov 0   ;;  %v26_v9 = vlaneseq  ;;  %vm45_vm2 = vcmask 7168   ;;  %s85_s0 = inlined_call_operand.vmem [shape: f32[8,32], index: 0, kind: input, shape index: {}]   ;;  %s86_s1 = inlined_call_operand.vmem [shape: s32[8,1], index: 1, kind: input, shape index: {}]   ;;  %s87_s2 = inlined_call_operand.vmem [shape: f32[8,1], index: 2, kind: output, shape index: {}]  }
   0x1   :  { %v11_v0 = vld [vmem:[%s85_s0] sm:$0xff]  ;;  %52 = vset.pattern.permute.xlu0 %v57_v1 }
   0x2   :  { %v14_v2 = vsel %vm13_vm0, %v11_v0, -inf  ;;  %v12_v3 = vld [vmem:[%s86_s1] sm:$0xff]  ;;  %v27_v10 = vand.u32 127, %v26_v9 }
   0x3   :  { %15 = vmax.xlane.f32.xlu0 %v14_v2 }
  0x17   :  { %29 = vperm.xlu0 %52, %v12_v3  }
  0x76   :  { %v16_v4 = vpop.xlane.xlu0 %15 }
  0x77   :  { %v17_v5 = vsub.f32 %v11_v0, %v16_v4 }
  0x79   :  { %v18_v6 = vmul.f32 1.442695, %v17_v5 }
  0x7b   :  { %53 = vpow2.f32 %v18_v6 }
  0x81   :  { %v54_v7 = vpop.eup %53 }
  0x82   :  { %v20_v8 = vsel %vm13_vm0, %v54_v7, 0.0 }
  0x83   :  { %21 = vadd.xlane.f32.xlu1 %v20_v8 }
  0x89   :  { %v30_v11 = vpop.permute.xlu0 %29 }
  0x8a   :  { %vm31_vm1 = vcmp.eq.s32.totalorder %v27_v10, %v30_v11 }
  0x8b   :  { %v32_v12 = vsel %vm31_vm1, %v11_v0, 0.0 }
  0x8c   :  { %v33_v13 = vsel %vm13_vm0, %v32_v12, 0.0 }
  0x8d   :  { %34 = vadd.xlane.f32.xlu1 %v33_v13 }
  0xf6   :  { %v22_v14 = vpop.xlane.xlu1 %21 }
  0xf7   :  { %55 = vlog2.f32 %v22_v14 }
  0xfd   :  { %v56_v15 = vpop.eup %55 }
  0xfe   :  { %v24_v16 = vmul.f32 0.6931472, %v56_v15 }
 0x100   :  { %v25_v17 = vadd.f32 %v24_v16, %v16_v4  ;;  %v35_v18 = vpop.xlane.xlu1 %34 }
 0x102   :  { %v36_v19 = vsub.f32 %v25_v17, %v35_v18 }
 0x104   :  { %v37_v20 = vmax.f32 %v36_v19, 0.0 }
 0x106   :  { %46 = vst.msk [vmem:[%s87_s2] sm:$0xff] %vm45_vm2, %v37_v20 }

</bundles_post_ra>
